<compile_context>
chip_gen: v7x
topology: tpu7x:2x2x1
jax: 0.10.0
libtpu: 0.0.40
codegen_flags: <defaults>
</compile_context>

<pallas_src>
import math
import numpy as np
import jax
import jax.numpy as jnp
from jax.experimental import pallas as pl
from jax.experimental.pallas import tpu as pltpu


# ------------------------------ small helpers ------------------------------

def _round_up(x, m):
    return ((x + m - 1) // m) * m


def _sublane_multiple(dtype):
    """Minimum second-to-last tile multiple for a dtype (8 f32, 16 bf16, 32 int8/fp8)."""
    itemsize = jnp.dtype(dtype).itemsize
    return max(8, 32 // max(itemsize, 1))


def _pick_tile(dim, target, multiple, *, min_grid=1):
    """Largest tile <= target that divides `dim`, is a multiple of `multiple`, and (when
    possible) leaves at least `min_grid` grid points along this axis. `dim` is always a
    multiple of 128 here, so this terminates."""
    if min_grid > 1 and dim // min_grid >= multiple:
        target = min(target, dim // min_grid)
    t = min(target, dim)
    t = max((t // multiple) * multiple, multiple)
    while dim % t != 0:
        t -= multiple
    return t


_VMEM_LIMIT_CACHE = None


def _vmem_limit_bytes():
    """Generation-aware scoped-VMEM limit: ~3/4 of physical VMEM
    (~96 MiB on v5e/v6e's 128 MiB, ~48 MiB on v7x's 64 MiB)."""
    global _VMEM_LIMIT_CACHE
    if _VMEM_LIMIT_CACHE is None:
        cap = 64 * 1024 * 1024
        try:
            cap = int(pltpu.get_tpu_info().vmem_capacity_bytes)
        except Exception:
            pass
        _VMEM_LIMIT_CACHE = (cap // 4) * 3
    return _VMEM_LIMIT_CACHE


# ----------------------------- Pallas kernels ------------------------------

def _hw_kernel(h_ref, w_ref, o_ref):
    # HW row-tile = H_tile @ W  (MXU matmul, f32 accumulation, lane-dense output)
    o_ref[...] = jnp.dot(
        h_ref[...], w_ref[...], preferred_element_type=jnp.float32
    ).astype(o_ref.dtype)


def pallas_hw_padded(H, W, *, tile_rows=2048, compute_dtype=jnp.float32):
    """HW = H @ W, returned zero-padded to (N_pad, b_pad) in compute_dtype (no slice/re-pad
    between the two kernels; the caller slices the final output only)."""
    N, a = H.shape
    b = W.shape[1]
    N_pad = _round_up(N, 128)
    b_pad = _round_up(b, 128)
    itemsize = jnp.dtype(compute_dtype).itemsize
    row_mult = _sublane_multiple(compute_dtype)

    # Big row tiles (fewer ~0.35us grid steps on this mem-bound matmul), clamped so the
    # double-buffered H tile + output tile stay well inside the scoped-VMEM limit.
    per_row_bytes = 2 * (a * itemsize + 2 * b_pad * itemsize)
    budget_rows = max(row_mult, (_vmem_limit_bytes() // 3) // max(per_row_bytes, 1))
    tm = _pick_tile(N_pad, min(tile_rows, budget_rows), row_mult, min_grid=2)

    H_p = jnp.pad(H.astype(compute_dtype), ((0, N_pad - N), (0, 0)))
    W_p = jnp.pad(W.astype(compute_dtype), ((0, 0), (0, b_pad - b)))

    out = pl.pallas_call(
        _hw_kernel,
        out_shape=jax.ShapeDtypeStruct((N_pad, b_pad), compute_dtype),
        grid_spec=pltpu.PrefetchScalarGridSpec(
            num_scalar_prefetch=0,
            grid=(N_pad // tm,),
            in_specs=[
                pl.BlockSpec((tm, a), lambda i: (i, 0)),       # row tile of H
                pl.BlockSpec((a, b_pad), lambda i: (0, 0)),    # full W (small, resident)
            ],
            out_specs=pl.BlockSpec((tm, b_pad), lambda i: (i, 0)),
        ),
        compiler_params=pltpu.CompilerParams(
            dimension_semantics=("parallel",),
            vmem_limit_bytes=_vmem_limit_bytes(),
        ),
    )(H_p, W_p)
    return out


def _ahw_bias_kernel(a_ref, hw_ref, dhi_ref, b_ref, o_ref):
    # out_tile = dhi_tile * ( sum_k A_raw[i,k] @ HW_scaled[k] ) + bias
    # The output block index is constant across k, so it stays VMEM-resident: accumulate
    # in place (no scratch, no extra VMEM->VMEM copy), finalize with the row scale + bias.
    @pl.when(pl.program_id(1) == 0)
    def _():
        o_ref[...] = jnp.zeros_like(o_ref)

    o_ref[...] += jnp.dot(a_ref[...], hw_ref[...], preferred_element_type=jnp.float32)

    @pl.when(pl.program_id(1) == pl.num_programs(1) - 1)
    def _():
        o_ref[...] = o_ref[...] * dhi_ref[...] + b_ref[...]


def pallas_ahw_bias_padded(A_pad, HW_pad, dhi_pad, bias, N, b, *, tile_m=1024, tile_k=2048):
    """out = (dhi *_rows (A_pad @ HW_pad) + bias)[:N, :b].

    A_pad: (N_pad, N_pad) unnormalized adjacency (f32 or bf16);
    HW_pad: (N_pad, b_pad) feature slab (already dhi-row-scaled for the normalized path);
    dhi_pad: (N_pad, 1) f32 row scale (ones when A is already normalized);
    bias: (b,) f32.
    """
    N_pad = A_pad.shape[0]
    b_pad = HW_pad.shape[1]
    a_item = jnp.dtype(A_pad.dtype).itemsize
    hw_item = jnp.dtype(HW_pad.dtype).itemsize
    row_mult = _sublane_multiple(A_pad.dtype)
    limit = _vmem_limit_bytes()

    # tm capped at N_pad/2 so the "parallel" M axis has >=2 grid points (v7x megacore).
    tm = _pick_tile(N_pad, tile_m, row_mult, min_grid=2)
    tk = _pick_tile(N_pad, tile_k, 128)

    def _fits(tm_, tk_):
        foot = (2 * tm_ * tk_ * a_item          # A tile, double-buffered (dominant HBM stream)
                + 2 * tk_ * b_pad * hw_item     # HW K-slab, double-buffered
                + 2 * tm_ * b_pad * 4           # resident f32 output tile (+writeback buffer)
                + 2 * tm_ * 4 + 2 * b_pad * 4)  # dhi + bias
        return foot <= (limit * 2) // 3

    while not _fits(tm, tk):
        if tk > 128:
            tk = _pick_tile(N_pad, tk // 2, 128)
        elif tm > row_mult:
            tm = _pick_tile(N_pad, max(tm // 2, row_mult), row_mult, min_grid=2)
        else:
            break

    bias_p = jnp.pad(bias.astype(jnp.float32).reshape(1, b), ((0, 0), (0, b_pad - b)))

    out = pl.pallas_call(
        _ahw_bias_kernel,
        out_shape=jax.ShapeDtypeStruct((N_pad, b_pad), jnp.float32),
        grid_spec=pltpu.PrefetchScalarGridSpec(
            num_scalar_prefetch=0,
            grid=(N_pad // tm, N_pad // tk),           # reduction axis last
            in_specs=[
                pl.BlockSpec((tm, tk), lambda i, k: (i, k)),      # A tile
                pl.BlockSpec((tk, b_pad), lambda i, k: (k, 0)),   # HW K-slab
                pl.BlockSpec((tm, 1), lambda i, k: (i, 0)),       # dhi row scale (finalize)
                pl.BlockSpec((1, b_pad), lambda i, k: (0, 0)),    # bias (broadcast)
            ],
            out_specs=pl.BlockSpec((tm, b_pad), lambda i, k: (i, 0)),
        ),
        compiler_params=pltpu.CompilerParams(
            dimension_semantics=("parallel", "arbitrary"),
            vmem_limit_bytes=limit,
        ),
    )(A_pad, HW_pad, dhi_pad, bias_p)
    return out[:N, :b]


# -------------- device-side hypergraph Laplacian (jnp, no host trip) --------------
# TODO(synk): the ragged hyperedge -> (padded index matrix, degree) packing is host-side
# static-graph preprocessing; the data-dependent part (argmax/argmin selection, mediator
# edges, scatter-add adjacency) runs on device with jnp gather/scatter rather than Pallas.

def pack_hyperedges(E_incidence):
    """List of binary incidence vectors -> (padded member-index matrix, degrees)."""
    members = [np.asarray(e).nonzero()[0] for e in E_incidence]
    max_deg = max(len(m) for m in members)
    e_idx = np.full((len(members), max_deg), -1, dtype=np.int32)
    deg = np.zeros((len(members),), dtype=np.int32)
    for r, mm in enumerate(members):
        e_idx[r, : len(mm)] = mm
        deg[r] = len(mm)
    return jnp.asarray(e_idx), jnp.asarray(deg)


def laplacian_raw_jnp(n, n_pad, e_idx, deg, HW_pad, rv_pad, m=True, adj_dtype=jnp.float32):
    """Device-side Laplacian(): returns (adj_raw_padded, dhi_padded).

    adj_raw is the UNnormalized adjacency (including unit self-loops), built directly at
    (n_pad, n_pad) in adj_dtype so no pad / cast / eye-add pass is needed before the matmul
    kernel. dhi = D^{-1/2}; the symmetric normalization is folded into the A@HW kernel as
    out = dhi *_rows (adj_raw @ (dhi *_rows HW)).
    """
    num_e, max_deg = e_idx.shape
    valid = e_idx >= 0
    safe_idx = jnp.where(valid, e_idx, 0)

    proj = HW_pad.astype(jnp.float32) @ rv_pad.astype(jnp.float32)   # (n_pad,)
    p = proj[safe_idx]                                               # (num_e, max_deg)
    s = jnp.argmax(jnp.where(valid, p, -jnp.inf), axis=1)
    i = jnp.argmin(jnp.where(valid, p, jnp.inf), axis=1)
    ar = jnp.arange(num_e)
    Se = safe_idx[ar, s]
    Ie = safe_idx[ar, i]

    degf = deg.astype(jnp.float32)
    w = (1.0 / (2.0 * degf - 3.0)) if m else (1.0 / degf)            # (num_e,)

    rows = [Se, Ie]
    cols = [Ie, Se]
    vals = [w, w]
    if m:
        Se_b = jnp.broadcast_to(Se[:, None], (num_e, max_deg))
        Ie_b = jnp.broadcast_to(Ie[:, None], (num_e, max_deg))
        is_med = valid & (e_idx != Se[:, None]) & (e_idx != Ie[:, None])
        wm = jnp.where(is_med, w[:, None], 0.0)
        for r, c in ((Se_b, safe_idx), (Ie_b, safe_idx), (safe_idx, Se_b), (safe_idx, Ie_b)):
            rows.append(r.reshape(-1))
            cols.append(c.reshape(-1))
            vals.append(wm.reshape(-1))

    # unit self-loops folded into the same scatter-add (no separate jnp.eye materialize+add)
    diag = jnp.arange(n)
    rows.append(diag)
    cols.append(diag)
    vals.append(jnp.ones((n,), jnp.float32))

    rows = jnp.concatenate(rows)
    cols = jnp.concatenate(cols)
    vals = jnp.concatenate(vals).astype(jnp.float32)

    adj = jnp.zeros((n_pad, n_pad), jnp.float32).at[rows, cols].add(vals)
    d = adj.sum(axis=1)
    dhi = jnp.where(d > 0, 1.0 / jnp.sqrt(d), 0.0).reshape(n_pad, 1)
    # cast where A is produced (bf16 halves the dominant N^2 HBM stream of kernel 2)
    return adj.astype(adj_dtype), dhi


# ---------------- host numpy reference Laplacian (for correctness check only) -------------

def laplacian_dense_np(V, E, X, rv, m=True):
    edges, weights = [], {}
    for k in E:
        hyperedge = np.asarray(k).nonzero()[0]
        p = np.dot(X[hyperedge], rv)
        s, i = int(np.argmax(p)), int(np.argmin(p))
        Se, Ie = int(hyperedge[s]), int(hyperedge[i])
        if m:
            c = 2 * len(hyperedge) - 3
            pairs = [(Se, Ie), (Ie, Se)]
            for mediator in hyperedge:
                mediator = int(mediator)
                if mediator != Se and mediator != Ie:
                    pairs += [(Se, mediator), (Ie, mediator), (mediator, Se), (mediator, Ie)]
            wgt = 1.0 / c
        else:
            pairs = [(Se, Ie), (Ie, Se)]
            wgt = 1.0 / len(hyperedge)
        for (u, v) in pairs:
            edges.append([u, v])
            weights[(u, v)] = weights.get((u, v), 0.0) + float(wgt)

    adj = np.zeros((V, V), dtype=np.float32)
    for (u, v) in {tuple(e): None for e in edges}:
        adj[u, v] = weights[(u, v)]
    adj = adj + np.eye(V, dtype=np.float32)
    d = adj.sum(1)
    with np.errstate(divide="ignore"):
        dhi = np.power(d, -0.5)
    dhi[np.isinf(dhi)] = 0.0
    dhi[np.isnan(dhi)] = 0.0
    return ((adj * dhi[:, None]) * dhi[None, :]).astype(np.float32)


# ----------------------------- module wrapper -------------------------------

class HyperGraphConvolutionPallas:
    """HyperGCN layer. compute_dtype controls the MXU-input / A-stream dtype of both kernels
    (f32 accumulation always). Default bfloat16 halves the HBM-bound N^2 adjacency traffic on
    v5e/v6e/v7x (~1e-3 relative error vs exact f32); pass compute_dtype=jnp.float32 for the
    exact original semantics."""

    def __init__(self, a, b, key, reapproximate=True,
                 compute_dtype=jnp.bfloat16, tile_m=1024, tile_k=2048, tile_rows_hw=2048):
        self.a, self.b = a, b
        self.reapproximate = reapproximate
        self.compute_dtype = compute_dtype
        self.tile_m, self.tile_k, self.tile_rows_hw = tile_m, tile_k, tile_rows_hw
        std = 1.0 / math.sqrt(b)
        kw, kb, krv = jax.random.split(key, 3)
        self.W = jax.random.uniform(kw, (a, b), jnp.float32, -std, std)
        self.bias = jax.random.uniform(kb, (b,), jnp.float32, -std, std)
        # TODO(synk): the original draws a fresh np.random rv per forward (host-side,
        # non-jittable); here a deterministic jax.random key is used when rv is not passed.
        self._rv_key = krv

    def __call__(self, structure, H, m=True, rv=None):
        N = H.shape[0]
        b = self.b
        N_pad = _round_up(N, 128)
        b_pad = _round_up(b, 128)

        # kernel 1: HW stays padded and in compute_dtype for kernel 2 (no slice/re-pad/convert)
        HW_pad = pallas_hw_padded(H, self.W, tile_rows=self.tile_rows_hw,
                                  compute_dtype=self.compute_dtype)

        if self.reapproximate:
            e_idx, deg = structure
            if rv is None:
                rv = jax.random.uniform(self._rv_key, (b,), jnp.float32)
            rv_pad = jnp.pad(rv.astype(jnp.float32), (0, b_pad - b))
            A_pad, dhi_pad = laplacian_raw_jnp(N, N_pad, e_idx, deg, HW_pad, rv_pad, m,
                                               adj_dtype=self.compute_dtype)
            # fold D^{-1/2} into the (cheap, N x b) HW stream instead of an N^2 pass over A
            HW_in = (dhi_pad * HW_pad.astype(jnp.float32)).astype(self.compute_dtype)
        else:
            # structure is an already-normalized dense adjacency -> no extra row scale
            A = jnp.asarray(structure)
            A_pad = jnp.pad(A.astype(self.compute_dtype), ((0, N_pad - N), (0, N_pad - N)))
            dhi_pad = jnp.ones((N_pad, 1), jnp.float32)
            HW_in = HW_pad

        return pallas_ahw_bias_padded(A_pad, HW_in, dhi_pad, self.bias, N, b,
                                      tile_m=self.tile_m, tile_k=self.tile_k)


# --------------------------------- main -------------------------------------

if __name__ == "__main__":
    # N deliberately not a multiple of the tile / 128 to exercise padding; b=16 like the module.
    N, a, b = 200, 32, 16
    key = jax.random.PRNGKey(0)
    k_param, k_h = jax.random.split(key)

    # exact-f32 layer for the tight reference check
    layer_f32 = HyperGraphConvolutionPallas(a, b, k_param, reapproximate=True,
                                            compute_dtype=jnp.float32)
    H = jax.random.normal(k_h, (N, a), jnp.float32)

    # synthetic hyperedges as binary incidence vectors (original structure format)
    np_rng = np.random.RandomState(0)
    E_inc = []
    for _ in range(12):
        sz = int(np_rng.randint(3, 9))
        inc = np.zeros(N, dtype=np.int32)
        inc[np_rng.choice(N, size=sz, replace=False)] = 1
        E_inc.append(inc)
    e_idx, deg = pack_hyperedges(E_inc)

    # deterministic random projection vector (the original draws it inside Laplacian)
    rv_np = np.random.RandomState(1).rand(b).astype(np.float32)
    rv = jnp.asarray(rv_np)

    # ---- forward pass (reapproximate=True, mediators) ----
    out = layer_f32((e_idx, deg), H, m=True, rv=rv)
    out = jax.block_until_ready(out)
    assert out.shape == (N, b)

    # ---- reference check (same HW bits, numpy Laplacian, jnp matmul) ----
    HW_pl = pallas_hw_padded(H, layer_f32.W, compute_dtype=jnp.float32)[:N, :b]
    A_ref = jnp.asarray(
        laplacian_dense_np(N, E_inc, np.asarray(jax.device_get(HW_pl)), rv_np, m=True)
    )
    ref = A_ref @ HW_pl + layer_f32.bias
    np.testing.assert_allclose(np.asarray(out), np.asarray(ref), rtol=1e-4, atol=1e-4)

    # ---- default bf16 A/HW streams (f32 accumulation), reapproximate=False path ----
    layer_bf16 = HyperGraphConvolutionPallas(a, b, k_param, reapproximate=False)  # bf16 default
    out_bf16 = jax.block_until_ready(layer_bf16(A_ref, H, m=True))
    ref_bf16 = A_ref @ (H @ layer_f32.W) + layer_f32.bias
    np.testing.assert_allclose(np.asarray(out_bf16), np.asarray(ref_bf16),
                               rtol=5e-2, atol=5e-2)

    print("KERNEL_OK")
</pallas_src>

<mosaic_0001>
module attributes {stable_mosaic.version = 11 : i64} {
  func.func @_hw_kernel(%arg0: i32, %arg1: memref<128x32xf32, #tpu.memory_space<vmem>>, %arg2: memref<32x128xf32, #tpu.memory_space<vmem>>, %arg3: memref<128x128xf32, #tpu.memory_space<vmem>>) attributes {dimension_semantics = [#tpu.dimension_semantics<parallel>], iteration_bounds = array<i64: 2>, scalar_prefetch = 0 : i64, scratch_operands = 0 : i64, tpu.core_type = #tpu.core_type<tc>, window_params = [{transform_indices = @transform_0, window_bounds = array<i64: 128, 32>}, {pipeline_mode = #tpu.pipeline_mode<synchronous>, transform_indices = @transform_1, window_bounds = array<i64: 32, 128>}, {transform_indices = @transform_2, window_bounds = array<i64: 128, 128>}]} {
    %c0 = arith.constant 0 : index
    %c0_0 = arith.constant 0 : index
    %0 = vector.load %arg1[%c0, %c0_0] : memref<128x32xf32, #tpu.memory_space<vmem>>, vector<128x32xf32>
    %c0_1 = arith.constant 0 : index
    %c0_2 = arith.constant 0 : index
    %1 = vector.load %arg2[%c0_1, %c0_2] : memref<32x128xf32, #tpu.memory_space<vmem>>, vector<32x128xf32>
    %cst = arith.constant dense<0.000000e+00> : vector<128x128xf32>
    %2 = tpu.matmul %0, %1, %cst {dimension_numbers = #tpu.dot_dimension_numbers<[1], [0], [0], [1], [0, 0, 1, 1], [], []>} : vector<128x32xf32>, vector<32x128xf32>, vector<128x128xf32> -> vector<128x128xf32>
    %c0_3 = arith.constant 0 : index
    %c0_4 = arith.constant 0 : index
    %3 = vector.load %arg3[%c0_3, %c0_4] : memref<128x128xf32, #tpu.memory_space<vmem>>, vector<128x128xf32>
    tpu.vector_store %arg3[%c0_3, %c0_4], %2 {strides = array<i32>} : memref<128x128xf32, #tpu.memory_space<vmem>>, vector<128x128xf32>,
    return
  }
  func.func @transform_0(%arg0: i32) -> (i32, i32) {
    %c0_i32 = arith.constant 0 : i32
    %c0_i32_0 = arith.constant 0 : i32
    return %arg0, %c0_i32 : i32, i32
  }
  func.func @transform_1(%arg0: i32) -> (i32, i32) {
    %c0_i32 = arith.constant 0 : i32
    %c0_i32_0 = arith.constant 0 : i32
    %c0_i32_1 = arith.constant 0 : i32
    return %c0_i32, %c0_i32_0 : i32, i32
  }
  func.func @transform_2(%arg0: i32) -> (i32, i32) {
    %c0_i32 = arith.constant 0 : i32
    %c0_i32_0 = arith.constant 0 : i32
    return %arg0, %c0_i32 : i32, i32
  }
}

</mosaic_0001>

<bundles_post_ra>
// kernel: tpu_custom_call.1
= control target key start
LH: loop header
LB: loop body
LE: loop exit
PB: predicated region body
PF: predicated region fallthrough
CT: control target
= control target key end

     0   :  { %7 = vsyncpa [#allocation3], 0  ;;  %s838_s0 = inlined_call_operand.vmem [shape: f32[256,32], index: 0, kind: input, shape index: {}]   ;;  %s839_s1 = inlined_call_operand.vmem [shape: f32[32,128], index: 1, kind: input, shape index: {}]   ;;  %s840_s2 = inlined_call_operand.hbm [shape: f32[256,128], index: 2, kind: output, shape index: {}]  }
   0x1   :  { %9 = vsyncpa [#allocation3 + $0x1], 0  ;;  %s667_s9 = smov 0   ;;  %s669_s10 = smov 0  }
   0x2   :  { %s671_s11 = smov 0   ;;  %s673_s12 = smov 0  }
   0x3 LB: > { %s688_s13 = sadd.s32 4294967295, %s647_s12   ;;  %s451_s14 = sadd.s32 4294967294, %s647_s12   ;;  %s647_s12 = sphi %s673_s12, %s846_s12   ;;  %s643_s11 = sphi %s671_s11, %s845_s11   ;;  %s639_s10 = sphi %s669_s10, %s844_s10   ;;  %s635_s9 = sphi %s667_s9, %s843_s9  }
   0x4   : > { %s692_s15 = sadd.s32 1, %s647_s12   ;;  %s69_s16 = sadd.s32 1, %s643_s11 }
   0x5   : > { %s66_s17 = ssub.s32 %s647_s12, %s692_s15  ;;  %p79_p0 = scmp.ne.s32.totalorder %s643_s11, %s639_s10 }
   0x6   : > { %p67_p1 = scmp.eq.s32.totalorder %s66_s17, 0  ;;  %p80_p2 = scmp.eq.s32.totalorder %s688_s13, 1 }
   0x7   : > { %p85_p3 = scmp.ne.s32.totalorder %s639_s10, %s635_s9  ;;  %p86_p4 = scmp.eq.s32.totalorder %s451_s14, 1 }
   0x8   : > { %s703_s18 = scalar_select %p67_p1, %s643_s11, %s69_s16  }
   0x9   : > { %p705_p5 = por %p80_p2, %p79_p0  ;;  %p709_p6 = por %p86_p4, %p85_p3 }
   0xa   : > { %p454_p7 = scmp.ge.s32.totalorder %s647_s12, 1  ;;  %p116_p8 = scmp.lt.s32.totalorder %s647_s12, 3 }
   0xc   : > { %p117_p9 = pnand %p454_p7, %p116_p8 }
   0xd   : > { %v161_v0 = vld [vmem:[%s839_s1] sm:$0xff] (!%p117_p9)  ;;  %v162_v1 = vld [vmem:[%s839_s1 + $0x8] sm:$0xff] (!%p117_p9)  ;;  %v163_v2 = vld [vmem:[%s839_s1 + $0x10] sm:$0xff] (!%p117_p9)  ;;  %s456_s27 = sshll.u32 (!%p117_p9), %s688_s13, 4  ;;  %vm165_vm0 = vcmask (!%p117_p9), 261120   ;;  %s135_s6 = sand.u32 (!%p117_p9), 1, %s639_s10  }
   0xe   : > { %120 = sbr.rel (%p117_p9) target bundleno = 267 (0x10b), region = 28  ;;  %v532_v3 = vpack.c.bf16 (!%p117_p9), %v162_v1, %v161_v0  ;;  %v164_v4 = vld [vmem:[%s839_s1 + $0x18] sm:$0xff] (!%p117_p9)  ;;  %p139_p10 = scmp.lt.s32.totalorder (!%p117_p9), %s456_s27, 31 }
   0xf   : > { %v536_v5 = vpack.c.bf16 (!%p117_p9), %v164_v4, %v163_v2  ;;  %s455_s7 = sshll.u32 (!%p117_p9), %s135_s6, 7  ;;  %s479_s14 = sshll.u32 (!%p117_p9), %s688_s13, 11 }
  0x10   : > { %533 = vmatprep.subr.bf16.mxu0 (!%p117_p9), %v532_v3  ;;  %540 = vmatprep.subr.bf16.mxu1 (!%p117_p9), %v532_v3  ;;  %s768_s8 = scalar_lea.vmem (!%p117_p9), [#allocation2], %s455_s7  ;;  %s787_s22 = scalar_lea.hbm (!%p117_p9), %s840_s2, %s479_s14 }
  0x11   : > { %535 = vmatpush3.bf16.msra.mxu0 (!%p117_p9), %v532_v3  ;;  %542 = vmatpush3.bf16.msra.mxu1 (!%p117_p9), %v532_v3  ;;  %s389_s16 = sshll.u32 (!%p117_p9), %s768_s8, 4  ;;  %s797_s13 = scalar_lea.sflag (!%p117_p9), [#allocation3], %s135_s6  ;;  %s789_s16 = int_to_ptr.vmem [resolvable:$true] %s389_s16 }
  0x12   : > { %537 = vmatprep.subr.bf16.mxu0 (!%p117_p9), %v536_v5  ;;  %541 = vmatprep.subr.bf16.mxu1 (!%p117_p9), %v536_v5  ;;  %s585_s23 = scalar_lea.vmem (!%p117_p9), %s789_s16, 2048  ;;  %s649_s24 = smov (!%p117_p9), [#allocation2]  }
  0x13   : > { %p586_p11 = scmp.ne.s32.totalorder (!%p117_p9), %s789_s16, %s585_s23  ;;  %s589_s25 = sshll.u32 (!%p117_p9), %s649_s24, 4  ;;  %s590_s25 = int_to_ptr.vmem [resolvable:$false] %s589_s25 }
  0x14   : > { %s591_s26 = scalar_lea.vmem (!%p117_p9), %s590_s25, 4096  ;;  %p592_p0 = scmp.lt.s32.totalorder (!%p117_p9), %s789_s16, %s590_s25 }
  0x15   : > { %s848_s27 = smov (!%p139_p10, %s456_s27), 31  ;;  %539 = vmatpush3.bf16.msra.mxu0 %v536_v5  ;;  %543 = vmatpush3.bf16.msra.mxu1 %v536_v5  ;;  %p587_p12 = pnand %p586_p11, %p705_p5 }
  0x16   : > { %s457_s30 = sshll.u32 %s848_s27, 3  ;;  %p593_p1 = scmp.lt.s32.totalorder %s591_s26, %s585_s23 }
  0x17   : > { %s731_s5 = scalar_lea.vmem %s838_s0, %s457_s30  ;;  %p588_p13 = pneg %p587_p12 }
  0x18   : > { %v145_v6 = vld [vmem:[%s731_s5] sm:$0xff]  ;;  %v146_v8 = vld [vmem:[%s731_s5 + $0x8] sm:$0xff]  ;;  %v147_v10 = vld [vmem:[%s731_s5 + $0x10] sm:$0xff]  ;;  %p594_p2 = por %p593_p1, %p592_p0 }
  0x19   : > { %v153_v7 = vld [vmem:[%s731_s5 + $0x40] sm:$0xff]  ;;  %v154_v9 = vld [vmem:[%s731_s5 + $0x48] sm:$0xff]  ;;  %508 = vmatprep.mubr.msk.f32.mxu0 %vm165_vm0, %v145_v6  ;;  %v155_v11 = vld [vmem:[%s731_s5 + $0x50] sm:$0xff] }
  0x1a   : > { %520 = vmatprep.mubr.msk.f32.mxu1 %vm165_vm0, %v153_v7  ;;  %509 = vmatmul.mubr.msk.f32.vlgmr.msra.gmra.mrb[0].mxu0 %vm165_vm0, %v146_v8  ;;  %v148_v12 = vld [vmem:[%s731_s5 + $0x18] sm:$0xff]  ;;  %v149_v14 = vld [vmem:[%s731_s5 + $0x20] sm:$0xff]  ;;  %v150_v16 = vld [vmem:[%s731_s5 + $0x28] sm:$0xff]  ;;  %p595_p3 = pnand %p594_p2, %p588_p13 }
  0x1b   : > { %521 = vmatmul.mubr.msk.f32.vlgmr.msra.gmra.mrb[0].mxu1 %vm165_vm0, %v154_v9  ;;  %511 = vmatprep.mubr.msk.f32.mxu0 %vm165_vm0, %v147_v10  ;;  %v156_v13 = vld [vmem:[%s731_s5 + $0x58] sm:$0xff]  ;;  %v157_v15 = vld [vmem:[%s731_s5 + $0x60] sm:$0xff]  ;;  %v158_v17 = vld [vmem:[%s731_s5 + $0x68] sm:$0xff] }
  0x1c   : > { %523 = vmatprep.mubr.msk.f32.mxu1 %vm165_vm0, %v155_v11  ;;  %v151_v18 = vld [vmem:[%s731_s5 + $0x30] sm:$0xff]  ;;  %v152_v20 = vld [vmem:[%s731_s5 + $0x38] sm:$0xff] }
  0x1d   : > { %v159_v19 = vld [vmem:[%s731_s5 + $0x70] sm:$0xff]  ;;  %v160_v21 = vld [vmem:[%s731_s5 + $0x78] sm:$0xff] }
  0x1e   : > { %512 = vmatmul.mubr.msk.f32.gmra.mrb[2].mxu0 %vm165_vm0, %v148_v12 }
  0x1f   : > { %524 = vmatmul.mubr.msk.f32.gmra.mrb[2].mxu1 %vm165_vm0, %v156_v13  ;;  %514 = vmatprep.mubr.msk.f32.mxu0 %vm165_vm0, %v149_v14 }
  0x20   : > { %526 = vmatprep.mubr.msk.f32.mxu1 %vm165_vm0, %v157_v15 }
  0x22   : > { %515 = vmatmul.mubr.msk.f32.gmra.mrb[4].mxu0 %vm165_vm0, %v150_v16 }
  0x23   : > { %527 = vmatmul.mubr.msk.f32.gmra.mrb[4].mxu1 %vm165_vm0, %v158_v17  ;;  %517 = vmatprep.mubr.msk.f32.mxu0 %vm165_vm0, %v151_v18 }
  0x24   : > { %529 = vmatprep.mubr.msk.f32.mxu1 %vm165_vm0, %v159_v19 }
  0x26   : > { %518 = vmatmul.mubr.msk.f32.gmra.mrb[6].mxu0 %vm165_vm0, %v152_v20 }
  0x27   : > { %530 = vmatmul.mubr.msk.f32.gmra.mrb[6].mxu1 %vm165_vm0, %v160_v21 }
  0xed   : > { %v510_v22 = vpop.f32.mrb[0].mxu0 }
  0xee   : > { %v522_v23 = vpop.f32.mrb[0].mxu1  ;;  %360 = vst [vmem:[%s768_s8 + $0x8] sm:$0xff] %v510_v22  ;;  %v280_v24 = vpop.f32.mrb[1].mxu0 }
  0xef   : > { %368 = vst [vmem:[%s768_s8 + $0x48] sm:$0xff] %v522_v23  ;;  %v320_v25 = vpop.f32.mrb[1].mxu1  ;;  %359 = vst [vmem:[%s768_s8] sm:$0xff] %v280_v24 }
  0xf0   : > { %367 = vst [vmem:[%s768_s8 + $0x40] sm:$0xff] %v320_v25 }
  0xf1   : > { %v513_v26 = vpop.f32.mrb[2].mxu0 }
  0xf2   : > { %v525_v27 = vpop.f32.mrb[2].mxu1  ;;  %362 = vst [vmem:[%s768_s8 + $0x18] sm:$0xff] %v513_v26  ;;  %v290_v28 = vpop.f32.mrb[3].mxu0 }
  0xf3   : > { %370 = vst [vmem:[%s768_s8 + $0x58] sm:$0xff] %v525_v27  ;;  %v330_v29 = vpop.f32.mrb[3].mxu1  ;;  %361 = vst [vmem:[%s768_s8 + $0x10] sm:$0xff] %v290_v28 }
  0xf4   : > { %369 = vst [vmem:[%s768_s8 + $0x50] sm:$0xff] %v330_v29 }
  0xf5   : > { %v516_v30 = vpop.f32.mrb[4].mxu0 }
  0xf6   : > { %v528_v31 = vpop.f32.mrb[4].mxu1  ;;  %364 = vst [vmem:[%s768_s8 + $0x28] sm:$0xff] %v516_v30  ;;  %v300_v32 = vpop.f32.mrb[5].mxu0 }
  0xf7   : > { %372 = vst [vmem:[%s768_s8 + $0x68] sm:$0xff] %v528_v31  ;;  %v340_v33 = vpop.f32.mrb[5].mxu1  ;;  %363 = vst [vmem:[%s768_s8 + $0x20] sm:$0xff] %v300_v32 }
  0xf8   : > { %371 = vst [vmem:[%s768_s8 + $0x60] sm:$0xff] %v340_v33 }
  0xf9   : > { %v519_v34 = vpop.f32.mrb[6].mxu0 }
  0xfa   : > { %v531_v35 = vpop.f32.mrb[6].mxu1  ;;  %366 = vst [vmem:[%s768_s8 + $0x38] sm:$0xff] %v519_v34  ;;  %v310_v36 = vpop.f32.mrb[7].mxu0 }
  0xfb   : > { %374 = vst [vmem:[%s768_s8 + $0x78] sm:$0xff] %v531_v35  ;;  %v350_v37 = vpop.f32.mrb[7].mxu1  ;;  %365 = vst [vmem:[%s768_s8 + $0x30] sm:$0xff] %v310_v36 }
  0xfc   : > { %373 = vst [vmem:[%s768_s8 + $0x70] sm:$0xff] %v350_v37 }
  0xfd   : > { %598 = shalt.err (!%p595_p3)
}
  0xfe   : > { %s599_s27 = scalar_lea.hbm %s787_s22, 2048  ;;  %s603_s30 = scalar_lea.hbm %s840_s2, 4096 }
  0xff   : > { %p600_p4 = scmp.ne.s32.totalorder %s787_s22, %s599_s27  ;;  %p604_p9 = scmp.lt.u32.totalorder %s787_s22, %s840_s2 }
 0x100   : > { %p605_p10 = scmp.lt.u32.totalorder %s603_s30, %s599_s27  ;;  %p607_p12 = scmp.lt.u32.totalorder %s599_s27, %s787_s22 }
 0x101   : > { %p601_p7 = pnand %p600_p4, %p705_p5 }
 0x102   : > { %p606_p11 = por %p605_p10, %p604_p9 }
 0x103   : > { %p602_p8 = pneg %p601_p7 }
 0x104   : > { %p608_p13 = por %p607_p12, %p606_p11 }
 0x106   : > { %p609_p0 = pnand %p608_p13, %p602_p8 }
 0x108   : > { %612 = shalt.err (!%p609_p0)
}
 0x109   : > { %s650_s5 = smov 128   ;;  %s651_s6 = smov 8  }
 0x10a   : > { %544 = dma.vmem_to_hbm [thread:$0]  (%p705_p5), %s789_s16, 2048, %s787_s22, %s797_s13, %s650_s5, %s650_s5, %s651_s6  }
 0x10b PF: > { %p550_p1 = scmp.ge.s32.totalorder %s647_s12, 2  ;;  %s404_s7 = sand.u32 1, %s635_s9  }
 0x10c   : > { %s405_s8 = scalar_lea.sflag [#allocation3], %s404_s7 }
 0x10d   : > { %p547_p2 = pnand %p550_p1, %p709_p6 }
 0x10f   : > { %630 = dma.done.wait (!%p547_p2), %s405_s8, 2048  }
 0x110   : > { %632 = vsyncadd (!%p547_p2), %s405_s8, 4294965248  ;;  %p12_p3 = scmp.ge.s32.totalorder %s692_s15, 4   ;;  %s843_s9 = smov %s639_s10 }
 0x111   : > { %s844_s10 = smov %s643_s11  ;;  %s845_s11 = smov %s703_s18 }
 0x112   : > { %s846_s12 = smov %s692_s15  ;;  %14 = sbr.rel (!%p12_p3) target bundleno = 3 (0x3), region = 63 }
 0x119   :  { %410 = vsyncpa [#allocation3], 1 }
 0x11a   :  { %412 = vsyncpa [#allocation3 + $0x1], 1 }

</bundles_post_ra>
